<compile_context>
chip_gen: v7x
topology: tpu7x:2x2x1
jax: 0.10.0
libtpu: 0.0.40
codegen_flags: <defaults>
</compile_context>

<pallas_src>
import jax
import jax.numpy as jnp
from jax import lax
from jax.experimental import pallas as pl
from jax.experimental.pallas import tpu as pltpu


def _round_up(x, m):
    return ((x + m - 1) // m) * m


def _cdiv(a, b):
    return (a + b - 1) // b


def _vmem_capacity_bytes():
    """Physical VMEM per core; conservative 64 MiB fallback (v7x-safe)."""
    try:
        cap = getattr(pltpu.get_tpu_info(), "vmem_capacity_bytes", None)
        if cap:
            return int(cap)
    except Exception:
        pass
    return 64 << 20


def _kernel_2d(m1_ref, m2_ref, w_ref, o_ref, inter_ref):
    # m1_ref: (TM, Dp), m2_ref: (TN, Dp), w_ref: (Dp, Dp) resident in VMEM,
    # o_ref:  (TM, TN), inter_ref: (TM, Dp) f32 scratch.
    # Scratch reuse across j is only valid while j is the innermost,
    # sequentially iterated ("arbitrary") grid axis.
    @pl.when(pl.program_id(2) == 0)
    def _():
        inter_ref[...] = jnp.dot(m1_ref[...], w_ref[...],
                                 preferred_element_type=jnp.float32)

    # out[s, t] = sum_e inter[s, e] * m2[t, e]  (NT contraction on the MXU,
    # same form as the reference flash-attention kernel -> no materialized
    # transpose of the m2 tile).
    o_ref[...] = lax.dot_general(
        inter_ref[...], m2_ref[...],
        dimension_numbers=(((1,), (1,)), ((), ())),
        preferred_element_type=jnp.float32,
    ).astype(o_ref.dtype)


def _make_kernel_3d(bb, tm, dp):
    def kernel(m1_ref, m2_ref, w_ref, o_ref, inter_ref):
        # m1_ref: (BB, TM, Dp), m2_ref: (BB, TN, Dp), w_ref: (Dp, Dp),
        # o_ref:  (BB, TM, TN), inter_ref: (BB, TM, Dp) f32 scratch.
        @pl.when(pl.program_id(2) == 0)
        def _():
            m1_flat = m1_ref[...].reshape(bb * tm, dp)
            inter = jnp.dot(m1_flat, w_ref[...],
                            preferred_element_type=jnp.float32)
            inter_ref[...] = inter.reshape(bb, tm, dp)

        o_ref[...] = lax.dot_general(
            inter_ref[...], m2_ref[...],
            dimension_numbers=(((2,), (2,)), ((0,), (0,))),
            preferred_element_type=jnp.float32,
        ).astype(o_ref.dtype)

    return kernel


def bilinear_matrix_attention(matrix_1, matrix_2, weight,
                              *, tm_max=512, tn_max=256, bb_max=8):
    B, S1, D1 = matrix_1.shape
    B2, S2, D2 = matrix_2.shape
    assert B == B2
    assert weight.shape == (D2, D1) and D1 == D2, \
        "torch.matmul semantics require matrix_1_dim == matrix_2_dim"
    D = D1
    out_dtype = matrix_1.dtype

    # dtype-dependent sublane granule (f32:8, bf16:16, int8/fp8:32)
    itemsize = jnp.dtype(out_dtype).itemsize
    sub = {4: 8, 2: 16, 1: 32}.get(itemsize, 8)

    Dp = _round_up(D, 128)            # lanes / MXU contraction dim (zero-pad exact)
    S1_al = _round_up(S1, sub)        # sublane alignment
    S2_al = _round_up(S2, 128)        # lane-dense output stores

    # ---- generation-aware VMEM budget ----------------------------------
    cap = _vmem_capacity_bytes()
    budget = (cap * 3) // 4           # ~96 MiB on v5e/v6e, ~48 MiB on v7x

    def vmem_bytes(tm, tn, bb):
        # double-buffered m1/m2/out tiles + single resident weight + f32 scratch
        return 4 * (2 * bb * (tm * Dp + tn * Dp + tm * tn)
                    + Dp * Dp + bb * tm * Dp)

    # ---- balanced tile selection ----------------------------------------
    # Split into the fewest tiles that satisfy tm_max/tn_max, then round each
    # tile only up to the hardware granule (<= sub-1 / <= 127 padding rows).
    def tiles_for(ni, nj):
        tm = _round_up(_cdiv(S1_al, ni), sub)
        tn = _round_up(_cdiv(S2_al, nj), 128)
        return tm, tn

    n_i = _cdiv(S1_al, tm_max)
    n_j = _cdiv(S2_al, tn_max)
    TM, TN = tiles_for(n_i, n_j)
    while vmem_bytes(TM, TN, 1) > budget and (TM > sub or TN > 128):
        if TN > 128 and TN >= TM:     # shrink TN before TM
            n_j += 1
        else:
            n_i += 1
        TM, TN = tiles_for(n_i, n_j)

    S1p = _round_up(S1_al, TM)
    S2p = _round_up(S2_al, TN)
    n_i = S1p // TM
    n_j = S2p // TN

    # Pack several batch elements per grid step when the whole (S1, S2) plane
    # fits in one tile; cap BB so B//BB >= 2 (keeps both v7x TCs busy).
    BB = 1
    if n_i == 1 and n_j == 1 and B >= 4:
        for cand in range(min(B // 2, bb_max), 1, -1):
            if B % cand == 0 and vmem_bytes(TM, TN, cand) <= budget:
                BB = cand
                break

    # ---- pads (skipped when already aligned; zero-pad of D is exact) -----
    m1_p = matrix_1
    if S1p != S1 or Dp != D:
        m1_p = jnp.pad(matrix_1, ((0, 0), (0, S1p - S1), (0, Dp - D)))
    m2_p = matrix_2
    if S2p != S2 or Dp != D:
        m2_p = jnp.pad(matrix_2, ((0, 0), (0, S2p - S2), (0, Dp - D)))
    w_p = weight
    if Dp != D:
        w_p = jnp.pad(weight, ((0, Dp - D), (0, Dp - D)))

    grid = (B // BB, n_i, n_j)

    if BB == 1:
        kernel = _kernel_2d
        in_specs = [
            pl.BlockSpec((None, TM, Dp), lambda b, i, j: (b, i, 0)),   # matrix_1 tile
            pl.BlockSpec((None, TN, Dp), lambda b, i, j: (b, j, 0)),   # matrix_2 tile
            pl.BlockSpec(memory_space=pltpu.MemorySpace.VMEM),         # weight: resident, single copy
        ]
        out_specs = pl.BlockSpec((None, TM, TN), lambda b, i, j: (b, i, j))
        scratch = [pltpu.VMEM((TM, Dp), jnp.float32)]
    else:
        kernel = _make_kernel_3d(BB, TM, Dp)
        in_specs = [
            pl.BlockSpec((BB, TM, Dp), lambda b, i, j: (b, i, 0)),
            pl.BlockSpec((BB, TN, Dp), lambda b, i, j: (b, j, 0)),
            pl.BlockSpec(memory_space=pltpu.MemorySpace.VMEM),
        ]
        out_specs = pl.BlockSpec((BB, TM, TN), lambda b, i, j: (b, i, j))
        scratch = [pltpu.VMEM((BB, TM, Dp), jnp.float32)]

    used = vmem_bytes(TM, TN, BB)
    vmem_limit = int(min(max(used + (8 << 20), 32 << 20), (cap * 9) // 10))

    flops = 2 * B * S1p * Dp * Dp + 2 * B * S1p * S2p * Dp
    bytes_accessed = itemsize * (B * S1p * Dp            # m1 read once per (b, i)
                                 + n_i * B * S2p * Dp    # m2 re-streamed per S1 tile
                                 + B * S1p * S2p         # padded output write
                                 + Dp * Dp)              # weight, once

    out_padded = pl.pallas_call(
        kernel,
        out_shape=jax.ShapeDtypeStruct((B, S1p, S2p), out_dtype),
        grid_spec=pltpu.PrefetchScalarGridSpec(
            num_scalar_prefetch=0,
            grid=grid,
            in_specs=in_specs,
            out_specs=out_specs,
            scratch_shapes=scratch,
        ),
        compiler_params=pltpu.CompilerParams(
            dimension_semantics=("parallel", "parallel", "arbitrary"),
            vmem_limit_bytes=vmem_limit,
        ),
        cost_estimate=pl.CostEstimate(
            flops=flops, transcendentals=0, bytes_accessed=bytes_accessed),
    )(m1_p, m2_p, w_p)

    if S1p == S1 and S2p == S2:
        return out_padded
    return out_padded[:, :S1, :S2]   # D padding never reaches the output


if __name__ == "__main__":
    # small shapes consistent with the module: matrix_1_dim == matrix_2_dim == 32
    B, S1, S2, D = 2, 8, 8, 32
    key = jax.random.PRNGKey(0)
    k1, k2, kw = jax.random.split(key, 3)
    matrix_1 = jax.random.normal(k1, (B, S1, D), dtype=jnp.float32)
    matrix_2 = jax.random.normal(k2, (B, S2, D), dtype=jnp.float32)

    # deterministic xavier_uniform_ init for nn.Linear(D, D).weight:
    # bound = sqrt(6 / (fan_in + fan_out))
    bound = (6.0 / (D + D)) ** 0.5
    weight = jax.random.uniform(kw, (D, D), minval=-bound, maxval=bound,
                                dtype=jnp.float32)

    out = bilinear_matrix_attention(matrix_1, matrix_2, weight)
    jax.block_until_ready(out)

    # plain-JAX reference of the exact PyTorch forward
    ref = jnp.einsum("bsd,de,bte->bst", matrix_1, weight, matrix_2)
    assert out.shape == (B, S1, S2)
    assert jnp.allclose(out, ref, atol=1e-5, rtol=1e-5), "mismatch vs reference"
    print("KERNEL_OK")
</pallas_src>

<mosaic_0001>
module attributes {stable_mosaic.version = 11 : i64} {
  func.func @_kernel_2d(%arg0: i32, %arg1: i32, %arg2: i32, %arg3: memref<1x8x128xf32, #tpu.memory_space<vmem>>, %arg4: memref<1x128x128xf32, #tpu.memory_space<vmem>>, %arg5: memref<128x128xf32, #tpu.memory_space<vmem>>, %arg6: memref<1x8x128xf32, #tpu.memory_space<vmem>>, %arg7: memref<8x128xf32, #tpu.memory_space<vmem>>) attributes {dimension_semantics = [#tpu.dimension_semantics<parallel>, #tpu.dimension_semantics<parallel>, #tpu.dimension_semantics<arbitrary>], iteration_bounds = array<i64: 2, 1, 1>, scalar_prefetch = 0 : i64, scratch_operands = 1 : i64, tpu.core_type = #tpu.core_type<tc>, window_params = [{transform_indices = @transform_0, window_bounds = array<i64: 1, 8, 128>}, {transform_indices = @transform_1, window_bounds = array<i64: 1, 128, 128>}, {pipeline_mode = #tpu.pipeline_mode<synchronous>, transform_indices = @transform_2, window_bounds = array<i64: 128, 128>}, {transform_indices = @transform_3, window_bounds = array<i64: 1, 8, 128>}]} {
    %c0_i32 = arith.constant 0 : i32
    %0 = arith.cmpi eq, %arg2, %c0_i32 : i32
    %1 = arith.extui %0 : i1 to i32
    %c0_i32_0 = arith.constant 0 : i32
    %2 = arith.cmpi ne, %1, %c0_i32_0 : i32
    scf.if %2 {
      %c0_8 = arith.constant 0 : index
      %c0_9 = arith.constant 0 : index
      %c0_10 = arith.constant 0 : index
      %10 = vector.load %arg3[%c0_8, %c0_9, %c0_10] : memref<1x8x128xf32, #tpu.memory_space<vmem>>, vector<1x8x128xf32>
      %11 = vector.shape_cast %10 : vector<1x8x128xf32> to vector<8x128xf32>
      %c0_11 = arith.constant 0 : index
      %c0_12 = arith.constant 0 : index
      %12 = vector.load %arg5[%c0_11, %c0_12] : memref<128x128xf32, #tpu.memory_space<vmem>>, vector<128x128xf32>
      %cst_13 = arith.constant dense<0.000000e+00> : vector<8x128xf32>
      %13 = tpu.matmul %11, %12, %cst_13 {dimension_numbers = #tpu.dot_dimension_numbers<[1], [0], [0], [1], [0, 0, 1, 1], [], []>} : vector<8x128xf32>, vector<128x128xf32>, vector<8x128xf32> -> vector<8x128xf32>
      %c0_14 = arith.constant 0 : index
      %c0_15 = arith.constant 0 : index
      %14 = vector.load %arg7[%c0_14, %c0_15] : memref<8x128xf32, #tpu.memory_space<vmem>>, vector<8x128xf32>
      tpu.vector_store %arg7[%c0_14, %c0_15], %13 {strides = array<i32>} : memref<8x128xf32, #tpu.memory_space<vmem>>, vector<8x128xf32>,
    } else {
    }
    %c0 = arith.constant 0 : index
    %c0_1 = arith.constant 0 : index
    %3 = vector.load %arg7[%c0, %c0_1] : memref<8x128xf32, #tpu.memory_space<vmem>>, vector<8x128xf32>
    %c0_2 = arith.constant 0 : index
    %c0_3 = arith.constant 0 : index
    %c0_4 = arith.constant 0 : index
    %4 = vector.load %arg4[%c0_2, %c0_3, %c0_4] : memref<1x128x128xf32, #tpu.memory_space<vmem>>, vector<1x128x128xf32>
    %5 = vector.shape_cast %4 : vector<1x128x128xf32> to vector<128x128xf32>
    %cst = arith.constant dense<0.000000e+00> : vector<8x128xf32>
    %6 = tpu.matmul %3, %5, %cst {dimension_numbers = #tpu.dot_dimension_numbers<[1], [1], [0], [0], [0, 0, 1, 0], [], []>} : vector<8x128xf32>, vector<128x128xf32>, vector<8x128xf32> -> vector<8x128xf32>
    %c0_5 = arith.constant 0 : index
    %c0_6 = arith.constant 0 : index
    %c0_7 = arith.constant 0 : index
    %7 = vector.load %arg6[%c0_5, %c0_6, %c0_7] : memref<1x8x128xf32, #tpu.memory_space<vmem>>, vector<1x8x128xf32>
    %8 = vector.shape_cast %7 : vector<1x8x128xf32> to vector<8x128xf32>
    %9 = vector.shape_cast %6 : vector<8x128xf32> to vector<1x8x128xf32>
    tpu.vector_store %arg6[%c0_5, %c0_6, %c0_7], %9 {strides = array<i32>} : memref<1x8x128xf32, #tpu.memory_space<vmem>>, vector<1x8x128xf32>,
    return
  }
  func.func @transform_0(%arg0: i32, %arg1: i32, %arg2: i32) -> (i32, i32, i32) {
    %c0_i32 = arith.constant 0 : i32
    %c0_i32_0 = arith.constant 0 : i32
    return %arg0, %arg1, %c0_i32 : i32, i32, i32
  }
  func.func @transform_1(%arg0: i32, %arg1: i32, %arg2: i32) -> (i32, i32, i32) {
    %c0_i32 = arith.constant 0 : i32
    %c0_i32_0 = arith.constant 0 : i32
    return %arg0, %arg2, %c0_i32 : i32, i32, i32
  }
  func.func @transform_2(%arg0: i32, %arg1: i32, %arg2: i32) -> (i32, i32) {
    %c0_i32 = arith.constant 0 : i32
    %c0_i32_0 = arith.constant 0 : i32
    %c0_i32_1 = arith.constant 0 : i32
    return %c0_i32, %c0_i32_0 : i32, i32
  }
  func.func @transform_3(%arg0: i32, %arg1: i32, %arg2: i32) -> (i32, i32, i32) {
    %c0_i32 = arith.constant 0 : i32
    return %arg0, %arg1, %arg2 : i32, i32, i32
  }
}

</mosaic_0001>

<bundles_post_ra>
// kernel: tpu_custom_call.1
= control target key start
LH: loop header
LB: loop body
LE: loop exit
PB: predicated region body
PF: predicated region fallthrough
CT: control target
= control target key end

     0   :  { %s1357_s0 = inlined_call_operand.hbm [shape: f32[2,8,128], index: 0, kind: input, shape index: {}]   ;;  %s1358_s1 = inlined_call_operand.hbm [shape: f32[2,128,128], index: 1, kind: input, shape index: {}]   ;;  %s1359_s2 = inlined_call_operand.hbm [shape: f32[128,128], index: 2, kind: input, shape index: {}]   ;;  %s1360_s3 = inlined_call_operand.hbm [shape: f32[2,8,128], index: 3, kind: output, shape index: {}]  }
   0x1   :  { %1366 = sst [smem:[#allocation14_spill]] %s1357_s0 }
   0x2   :  { %8 = vsyncpa [#allocation4], 0 }
   0x3   :  { %10 = vsyncpa [#allocation4 + $0x1], 0 }
   0x4   :  { %11 = vsyncpa [#allocation7], 0 }
   0x5   :  { %13 = vsyncpa [#allocation7 + $0x1], 0 }
   0x6   :  { %14 = vsyncpa [#allocation5], 0 }
   0x7   :  { %16 = vsyncpa [#allocation5 + $0x1], 0  ;;  %s1050_s12 = smov 0   ;;  %s1052_s13 = smov 0  }
   0x8   :  { %s1054_s14 = smov 0   ;;  %s1056_s15 = smov 0  }
   0x9   :  { %s1058_s16 = smov 0   ;;  %s1060_s17 = smov 0  }
   0xa LB: > { %s1081_s18 = sadd.s32 4294967295, %s1019_s17   ;;  %s587_s19 = sadd.s32 4294967294, %s1019_s17   ;;  %s1019_s17 = sphi %s1060_s17, %s22_s17   ;;  %s1015_s16 = sphi %s1058_s16, %s1388_s16   ;;  %s1011_s15 = sphi %s1056_s15, %s1387_s15   ;;  %s1007_s14 = sphi %s1054_s14, %s1386_s14   ;;  %s1003_s13 = sphi %s1052_s13, %s1385_s13   ;;  %s999_s12 = sphi %s1050_s12, %s1384_s12  }
   0xb   : > { %p63_p0 = scmp.ne.s32.totalorder %s1003_s13, %s999_s12  ;;  %p1361_p1 = scmp.eq.s32.totalorder %s1081_s18, 0 }
   0xc   : > { %p146_p3 = scmp.eq.s32.totalorder %s587_s19, 1  ;;  %p588_p5 = scmp.ge.s32.totalorder %s1019_s17, 1 }
   0xd   : > { %p1090_p4 = por %p1361_p1, %p63_p0  ;;  %p153_p7 = scmp.lt.s32.totalorder %s1019_s17, 3 }
   0xe   : > { %p1095_p6 = por %p146_p3, %p63_p0  ;;  %s1021_s23 = smov [#allocation8]  }
   0xf   : > { %s1367_s20 = scalar_select %p1090_p4, 1, 0 }
  0x10   : > { %s1368_s21 = scalar_select %p1095_p6, 1, 0 }
  0x11   : > { %p1100_p8 = pnand %p588_p5, %p153_p7  ;;  %s165_s24 = sshll.u32 %s1021_s23, 4  ;;  %s166_s24 = int_to_ptr.vmem [resolvable:$true] %s165_s24 }
  0x12   : > { %s41_s26 = sadd.s32 1, %s1015_s16  ;;  %s841_s29 = scalar_lea.hbm %s1359_s2, 2048 }
  0x13   : > { %s1369_s22 = scalar_select %p1100_p8, 1, 0 }
  0x14   : > { %p768_p9 = pneg %p1100_p8  ;;  %p842_p12 = scmp.ne.s32.totalorder %s1359_s2, %s841_s29 }
  0x15   : > { %p848_p5 = scmp.lt.u32.totalorder %s841_s29, %s1359_s2 }
  0x16   : > { %p1109_p11 = pnand %p768_p9, %p1361_p1 }
  0x18   : > { %p843_p13 = pneg %p1109_p11 }
  0x1a   : > { %p844_p0 = pnand %p843_p13, %p842_p12 }
  0x1c   : > { %p845_p3 = pneg %p844_p0 }
  0x1e   : > { %p850_p7 = pnand %p848_p5, %p845_p3 }
  0x20   : > { %853 = shalt.err (!%p850_p7)
}
  0x21   : > { %s854_s7 = scalar_lea.vmem %s166_s24, 2048  ;;  %p862_p2 = scmp.lt.s32.totalorder %s166_s24, %s166_s24 }
  0x22   : > { %p855_p9 = scmp.ne.s32.totalorder %s166_s24, %s854_s7  ;;  %p863_p6 = scmp.lt.s32.totalorder %s854_s7, %s854_s7 }
  0x24   : > { %p857_p10 = pnand %p855_p9, %p843_p13  ;;  %p864_p4 = por %p863_p6, %p862_p2 }
  0x26   : > { %p858_p1 = pneg %p857_p10 }
  0x28   : > { %p865_p8 = pnand %p864_p4, %p858_p1 }
  0x2a   : > { %868 = shalt.err (!%p865_p8)
}
  0x2b   : > { %s1364_s8 = smov 128   ;;  %s1365_s9 = smov 8  }
  0x2c   : > { %771 = dma.hbm_to_vmem [thread:$0]  (!%p1109_p11), %s1359_s2, 2048, %s166_s24, [#allocation7], %s1364_s8, %s1364_s8, %s1365_s9  }
  0x2d   : > { %p43_p1 = scmp.ge.s32.totalorder %s41_s26, 2  ;;  %s50_s19 = sadd.s32 1, %s1007_s14 }
  0x2e   : > { %p57_p2 = scmp.ne.s32.totalorder %s1007_s14, %s1003_s13  ;;  %p58_p4 = scmp.eq.s32.totalorder %s1019_s17, 0 }
  0x2f   : > { %s1390_s26 = smov (%p43_p1, %s41_s26), 0  ;;  %p1372_p8 = scmp.eq.s32.totalorder %s1081_s18, 1 }
  0x30   : > { %p1139_p6 = por %p58_p4, %p57_p2  ;;  %s45_s27 = ssub.s32 %s1015_s16, %s1390_s26 }
  0x31   : > { %p1145_p10 = por %p1372_p8, %p57_p2  ;;  %p784_p11 = scmp.lt.s32.totalorder %s1019_s17, 2 }
  0x32   : > { %p48_p12 = scmp.eq.s32.totalorder %s45_s27, 0  ;;  %s1153_s24 = sand.u32 1, %s1007_s14  }
  0x33   : > { %s591_s28 = sshll.u32 %s1153_s24, 3  ;;  %s592_s30 = sshll.u32 %s1015_s16, 7 }
  0x34   : > { %s1157_s29 = scalar_select %p48_p12, %s1007_s14, %s50_s19  }
  0x35   : > { %s1374_s0 = sld [smem:[#allocation14_spill]]  ;;  %s183_s7 = scalar_lea.vmem [#allocation3], %s591_s28 }
  0x36   : > { %s191_s10 = sshll.u32 %s183_s7, 4  ;;  %p1169_p13 = pnand %p784_p11, %p1139_p6  ;;  %s1165_s10 = int_to_ptr.vmem [resolvable:$true] %s191_s10 }
  0x37   : > { %s593_s19 = sshll.u32 %s1153_s24, 7  ;;  %s605_s27 = sshll.u32 %s1015_s16, 11 }
  0x38   : > { %s180_s4 = scalar_lea.sflag [#allocation4], %s1153_s24  ;;  %p871_p3 = pneg %p1169_p13 }
  0x3b   : > { %s1163_s6 = scalar_lea.hbm %s1374_s0, %s592_s30  ;;  %s874_s23 = scalar_lea.hbm %s1374_s0, 256 }
  0x3c   : > { %s869_s30 = scalar_lea.hbm %s1163_s6, 128  ;;  %p875_p9 = scmp.lt.u32.totalorder %s1163_s6, %s1374_s0 }
  0x3d   : > { %p870_p0 = scmp.ne.s32.totalorder %s1163_s6, %s869_s30  ;;  %p876_p1 = scmp.lt.u32.totalorder %s874_s23, %s869_s30 }
  0x3e   : > { %p878_p4 = scmp.lt.u32.totalorder %s869_s30, %s1163_s6 }
  0x3f   : > { %p872_p5 = pnand %p871_p3, %p870_p0  ;;  %p877_p2 = por %p876_p1, %p875_p9 }
  0x41   : > { %p873_p7 = pneg %p872_p5  ;;  %p879_p6 = por %p878_p4, %p877_p2 }
  0x43   : > { %p880_p8 = pnand %p879_p6, %p873_p7 }
  0x45   : > { %883 = shalt.err (!%p880_p8)
}
  0x46   : > { %s884_s9 = scalar_lea.vmem %s1165_s10, 128  ;;  %s1024_s28 = smov [#allocation3]  }
  0x47   : > { %p885_p11 = scmp.ne.s32.totalorder %s1165_s10, %s884_s9  ;;  %s889_s5 = sshll.u32 %s1024_s28, 4  ;;  %s890_s5 = int_to_ptr.vmem [resolvable:$false] %s889_s5 }
  0x48   : > { %s891_s8 = scalar_lea.vmem %s890_s5, 256  ;;  %p892_p5 = scmp.lt.s32.totalorder %s1165_s10, %s890_s5 }
  0x49   : > { %p887_p12 = pnand %p885_p11, %p871_p3  ;;  %p893_p9 = scmp.lt.s32.totalorder %s891_s8, %s884_s9 }
  0x4b   : > { %p888_p0 = pneg %p887_p12  ;;  %p894_p1 = por %p893_p9, %p892_p5 }
  0x4d   : > { %p895_p2 = pnand %p894_p1, %p888_p0 }
  0x4f   : > { %898 = shalt.err (!%p895_p2)
}
  0x50   : > { %775 = dma.hbm_to_vmem [thread:$0]  (!%p1169_p13), %s1163_s6, 128, %s1165_s10, %s180_s4  }
  0x51   : > { %s202_s30 = scalar_lea.vmem [#allocation6], %s593_s19  ;;  %s198_s7 = sand.u32 1, %s1019_s17  }
  0x52   : > { %s211_s23 = sshll.u32 %s202_s30, 4  ;;  %s1211_s5 = scalar_lea.hbm %s1358_s1, %s605_s27  ;;  %s1204_s23 = int_to_ptr.vmem [resolvable:$true] %s211_s23 }
  0x53   : > { %s1213_s8 = scalar_lea.sflag [#allocation7], %s198_s7  ;;  %s899_s0 = scalar_lea.hbm %s1211_s5, 2048 }
  0x54   : > { %p900_p7 = scmp.ne.s32.totalorder %s1211_s5, %s899_s0  ;;  %s904_s10 = scalar_lea.hbm %s1358_s1, 4096 }
  0x55   : > { %p905_p8 = scmp.lt.u32.totalorder %s1211_s5, %s1358_s1  ;;  %p906_p11 = scmp.lt.u32.totalorder %s904_s10, %s899_s0 }
  0x56   : > { %p902_p4 = pnand %p900_p7, %p871_p3  ;;  %p908_p0 = scmp.lt.u32.totalorder %s899_s0, %s1211_s5 }
  0x57   : > { %p907_p12 = por %p906_p11, %p905_p8 }
  0x58   : > { %p903_p6 = pneg %p902_p4 }
  0x59   : > { %p909_p5 = por %p908_p0, %p907_p12 }
  0x5b   : > { %p910_p9 = pnand %p909_p5, %p903_p6 }
  0x5d   : > { %913 = shalt.err (!%p910_p9)
}
  0x5e   : > { %s914_s27 = scalar_lea.vmem %s1204_s23, 2048  ;;  %s1025_s30 = smov [#allocation6]  }
  0x5f   : > { %p915_p1 = scmp.ne.s32.totalorder %s1204_s23, %s914_s27  ;;  %s919_s7 = sshll.u32 %s1025_s30, 4  ;;  %s920_s7 = int_to_ptr.vmem [resolvable:$false] %s919_s7 }
  0x60   : > { %s921_s9 = scalar_lea.vmem %s920_s7, 4096  ;;  %p922_p4 = scmp.lt.s32.totalorder %s1204_s23, %s920_s7 }
  0x61   : > { %p917_p2 = pnand %p915_p1, %p871_p3  ;;  %p923_p8 = scmp.lt.s32.totalorder %s921_s9, %s914_s27 }
  0x63   : > { %p918_p7 = pneg %p917_p2  ;;  %p924_p11 = por %p923_p8, %p922_p4 }
  0x65   : > { %p925_p12 = pnand %p924_p11, %p918_p7 }
  0x67   : > { %928 = shalt.err (!%p925_p12)
}
  0x68   : > { %s1376_s0 = smov 8   ;;  %s1377_s28 = smov 128  }
  0x69   : > { %778 = dma.hbm_to_vmem [thread:$0]  (!%p1169_p13), %s1211_s5, 2048, %s1204_s23, %s1213_s8, %s1377_s28, %s1377_s28, %s1376_s0  }
  0x6a   : > { %p1378_p3 = scmp.ne.s32.totalorder %s1369_s22, 0 }
  0x6b   : > { %s1245_s24 = sand.u32 (!%p1378_p3), 1, %s1003_s13   ;;  %p1379_p6 = scmp.ne.s32.totalorder (!%p1378_p3), %s1367_s20, 0 }
  0x6c   : > { %223 = sbr.rel (%p1378_p3) target bundleno = 594 (0x252), region = 32  ;;  %s597_s6 = sshll.u32 (!%p1378_p3), %s1245_s24, 3 }
  0x6d   : > { %s226_s10 = scalar_lea.sflag (!%p1378_p3), [#allocation4], %s1245_s24  ;;  %s1251_s11 = scalar_lea.vmem (!%p1378_p3), [#allocation3], %s597_s6 }
  0x73   : > { %982 = dma.done.wait (%p1379_p6), %s226_s10, 128  }
  0x74   : > { %984 = vsyncadd (%p1379_p6), %s226_s10, 4294967168  ;;  %s234_s22 = sand.u32 1, %s1081_s18   ;;  %s598_s23 = sshll.u32 %s1245_s24, 7 }
  0x75   : > { %s235_s5 = scalar_lea.sflag [#allocation7], %s234_s22  ;;  %s1259_s8 = scalar_lea.vmem [#allocation6], %s598_s23 }
  0x76   : > { %986 = dma.done.wait (%p1379_p6), %s235_s5, 2048  }
  0x77   : > { %988 = vsyncadd (%p1379_p6), %s235_s5, 4294965248  ;;  %p1380_p13 = scmp.eq.s32.totalorder %s1081_s18, 0 }
  0x79   : > { %990 = dma.done.wait (%p1380_p13), [#allocation7], 2048   ;;  %p1381_p0 = pmov %p1380_p13 }
  0x7a   : > { %v1026_v0 = vmov 0.0|0.0   ;;  %vm1027_vm0 = vmmov 0   ;;  %v1028_v1 = vmov 0.0   ;;  %v276_v2 = vld [vmem:[#allocation8] sm:$0xff]  ;;  %v277_v3 = vld [vmem:[#allocation8 + $0x8] sm:$0xff]  ;;  %v278_v4 = vld [vmem:[#allocation8 + $0x10] sm:$0xff] }
  0x7b   : > { %992 = vsyncadd (%p1381_p0), [#allocation7], 4294965248  ;;  %710 = vmatprep.subr.bf16.mxu0 %v1026_v0  ;;  %672 = vmatprep.mubr.msk.f32.mxu0 %vm1027_vm0, %v1028_v1  ;;  %v711_v5 = vpack.c.bf16 %v277_v3, %v276_v2  ;;  %v279_v6 = vld [vmem:[#allocation8 + $0x18] sm:$0xff]  ;;  %v280_v8 = vld [vmem:[#allocation8 + $0x20] sm:$0xff]  ;;  %s269_s18 = scalar_lea.vmem [#allocation9], %s597_s6  ;;  %s602_s19 = sshll.u32 %s1011_s15, 7 }
  0x7c   : > { %734 = vmatprep.subr.bf16.mxu1 %v1026_v0  ;;  %707 = vmatprep.mubr.msk.f32.mxu1 %vm1027_vm0, %v1028_v1  ;;  %v714_v7 = vpack.c.bf16 %v279_v6, %v278_v4  ;;  %v281_v9 = vld [vmem:[#allocation8 + $0x28] sm:$0xff]  ;;  %v364_v10 = vld [vmem:[%s1259_s8] sm:$0xff]  ;;  %v282_v14 = vld [vmem:[#allocation8 + $0x30] sm:$0xff]  ;;  %s467_s20 = sshll.u32 %s269_s18, 4  ;;  %s1310_s30 = scalar_lea.hbm %s1360_s3, %s602_s19  ;;  %s1305_s20 = int_to_ptr.vmem [resolvable:$true] %s467_s20 }
  0x7d   : > { %712 = vmatpush3.bf16.msra.mxu0 %v711_v5  ;;  %v365_v11 = vld [vmem:[%s1259_s8 + $0x8] sm:$0xff]  ;;  %v717_v12 = vpack.c.bf16 %v281_v9, %v280_v8  ;;  %v283_v15 = vld [vmem:[#allocation8 + $0x38] sm:$0xff]  ;;  %v366_v16 = vld [vmem:[%s1259_s8 + $0x10] sm:$0xff]  ;;  %s452_s7 = scalar_lea.sflag [#allocation5], %s1245_s24  ;;  %s929_s9 = scalar_lea.vmem %s1305_s20, 128 }
  0x7e   : > { %713 = vmatprep.subr.bf16.mxu0 %v1026_v0  ;;  %v735_v13 = vpack.c.bf16 %v365_v11, %v364_v10  ;;  %v367_v17 = vld [vmem:[%s1259_s8 + $0x18] sm:$0xff]  ;;  %v720_v18 = vpack.c.bf16 %v283_v15, %v282_v14  ;;  %v284_v19 = vld [vmem:[#allocation8 + $0x40] sm:$0xff]  ;;  %v285_v20 = vld [vmem:[#allocation8 + $0x48] sm:$0xff]  ;;  %p930_p5 = scmp.ne.s32.totalorder %s1305_s20, %s929_s9  ;;  %s1029_s15 = smov [#allocation9]  }
  0x7f   : > { %v738_v21 = vpack.c.bf16 %v367_v17, %v366_v16  ;;  %v723_v22 = vpack.c.bf16 %v285_v20, %v284_v19  ;;  %v286_v23 = vld [vmem:[#allocation8 + $0x50] sm:$0xff]  ;;  %v287_v24 = vld [vmem:[#allocation8 + $0x58] sm:$0xff]  ;;  %v368_v25 = vld [vmem:[%s1259_s8 + $0x20] sm:$0xff]  ;;  %s933_s0 = sshll.u32 %s1029_s15, 4  ;;  %s934_s0 = int_to_ptr.vmem [resolvable:$false] %s933_s0 }
  0x80   : > { %736 = vmatpush3.bf16.xpose.msra.mxu1 %v735_v13  ;;  %v369_v26 = vld [vmem:[%s1259_s8 + $0x28] sm:$0xff]  ;;  %v726_v27 = vpack.c.bf16 %v287_v24, %v286_v23  ;;  %v288_v28 = vld [vmem:[#allocation8 + $0x60] sm:$0xff]  ;;  %v290_v32 = vld [vmem:[#allocation8 + $0x70] sm:$0xff]  ;;  %p931_p9 = pnand %p930_p5, %p1145_p10  ;;  %s935_s28 = scalar_lea.vmem %s934_s0, 256 }
  0x81   : > { %715 = vmatpush3.bf16.msra.mxu0 %v714_v7  ;;  %737 = vmatprep.subr.bf16.mxu1 %v1026_v0  ;;  %v289_v29 = vld [vmem:[#allocation8 + $0x68] sm:$0xff]  ;;  %v741_v30 = vpack.c.bf16 %v369_v26, %v368_v25  ;;  %v291_v33 = vld [vmem:[#allocation8 + $0x78] sm:$0xff]  ;;  %v370_v34 = vld [vmem:[%s1259_s8 + $0x30] sm:$0xff]  ;;  %p936_p2 = scmp.lt.s32.totalorder %s1305_s20, %s934_s0  ;;  %p937_p7 = scmp.lt.s32.totalorder %s935_s28, %s929_s9 }
  0x82   : > { %716 = vmatprep.subr.bf16.mxu0 %v1026_v0  ;;  %v729_v31 = vpack.c.bf16 %v289_v29, %v288_v28  ;;  %v371_v35 = vld [vmem:[%s1259_s8 + $0x38] sm:$0xff]  ;;  %v732_v36 = vpack.c.bf16 %v291_v33, %v290_v32  ;;  %v372_v39 = vld [vmem:[%s1259_s8 + $0x40] sm:$0xff]  ;;  %v373_v40 = vld [vmem:[%s1259_s8 + $0x48] sm:$0xff]  ;;  %p932_p1 = pneg %p931_p9 }
  0x83   : > { %v744_v37 = vpack.c.bf16 %v371_v35, %v370_v34  ;;  %v275_v38 = vld [vmem:[%s1251_s11] sm:$0xff]  ;;  %v747_v41 = vpack.c.bf16 %v373_v40, %v372_v39  ;;  %v376_v45 = vld [vmem:[%s1259_s8 + $0x60] sm:$0xff]  ;;  %v377_v46 = vld [vmem:[%s1259_s8 + $0x68] sm:$0xff]  ;;  %p938_p4 = por %p937_p7, %p936_p2 }
  0x84   : > { %v374_v42 = vld [vmem:[%s1259_s8 + $0x50] sm:$0xff]  ;;  %v375_v43 = vld [vmem:[%s1259_s8 + $0x58] sm:$0xff]  ;;  %v753_v47 = vpack.c.bf16 %v377_v46, %v376_v45 }
  0x85   : > { %718 = vmatpush3.bf16.msra.mxu0 %v717_v12  ;;  %v750_v44 = vpack.c.bf16 %v375_v43, %v374_v42  ;;  %v378_v48 = vld [vmem:[%s1259_s8 + $0x70] sm:$0xff]  ;;  %v379_v49 = vld [vmem:[%s1259_s8 + $0x78] sm:$0xff]  ;;  %p939_p8 = pnand %p938_p4, %p932_p1 }
  0x86   : > { %719 = vmatprep.subr.bf16.mxu0 %v1026_v0  ;;  %v756_v50 = vpack.c.bf16 %v379_v49, %v378_v48 }
  0x88   : > { %739 = vmatpush3.bf16.xpose.msra.mxu1 %v738_v21 }
  0x89   : > { %721 = vmatpush3.bf16.msra.mxu0 %v720_v18  ;;  %740 = vmatprep.subr.bf16.mxu1 %v1026_v0 }
  0x8a   : > { %722 = vmatprep.subr.bf16.mxu0 %v1026_v0 }
  0x8d   : > { %724 = vmatpush3.bf16.msra.mxu0 %v723_v22 }
  0x8e   : > { %725 = vmatprep.subr.bf16.mxu0 %v1026_v0 }
  0x90   : > { %742 = vmatpush3.bf16.xpose.msra.mxu1 %v741_v30 }
  0x91   : > { %727 = vmatpush3.bf16.msra.mxu0 %v726_v27  ;;  %743 = vmatprep.subr.bf16.mxu1 %v1026_v0 }
  0x92   : > { %728 = vmatprep.subr.bf16.mxu0 %v1026_v0 }
  0x95   : > { %730 = vmatpush3.bf16.msra.mxu0 %v729_v31 }
  0x96   : > { %731 = vmatprep.subr.bf16.mxu0 %v1026_v0 }
  0x98   : > { %745 = vmatpush3.bf16.xpose.msra.mxu1 %v744_v37 }
  0x99   : > { %733 = vmatpush3.bf16.msra.mxu0 %v732_v36  ;;  %746 = vmatprep.subr.bf16.mxu1 %v1026_v0 }
  0x9c   : > { %673 = vmatmul.mubr.f32.vlgmr.msra.gmra.mrb[0].mxu0 %v275_v38 }
  0xa0   : > { %748 = vmatpush3.bf16.xpose.msra.mxu1 %v747_v41 }
  0xa1   : > { %749 = vmatprep.subr.bf16.mxu1 %v1026_v0 }
  0xa8   : > { %751 = vmatpush3.bf16.xpose.msra.mxu1 %v750_v44 }
  0xa9   : > { %752 = vmatprep.subr.bf16.mxu1 %v1026_v0 }
  0xb0   : > { %754 = vmatpush3.bf16.xpose.msra.mxu1 %v753_v47 }
  0xb1   : > { %755 = vmatprep.subr.bf16.mxu1 %v1026_v0 }
  0xb8   : > { %757 = vmatpush3.bf16.xpose.msra.mxu1 %v756_v50 }
 0x16f   : > { %v358_v51 = vpop.f32.mrb[0].mxu0 }
 0x170   : > { %v674_v52 = vpop.f32.mrb[1].mxu0  ;;  %708 = vmatmul.mubr.f32.vlgmr.msra.gmra.mrb[0].mxu1 %v358_v51 }
 0x243   : > { %v446_v53 = vpop.f32.mrb[0].mxu1 }
 0x244   : > { %450 = vst [vmem:[%s269_s18] sm:$0xff] %v446_v53  ;;  %v709_v54 = vpop.f32.mrb[1].mxu1 }
 0x245   : > { %942 = shalt.err (!%p939_p8)
}
 0x246   : > { %s943_s24 = scalar_lea.hbm %s1310_s30, 128  ;;  %s947_s11 = scalar_lea.hbm %s1360_s3, 256 }
 0x247   : > { %p944_p11 = scmp.ne.s32.totalorder %s1310_s30, %s943_s24  ;;  %p948_p6 = scmp.lt.u32.totalorder %s1310_s30, %s1360_s3 }
 0x248   : > { %p949_p13 = scmp.lt.u32.totalorder %s947_s11, %s943_s24  ;;  %p951_p5 = scmp.lt.u32.totalorder %s943_s24, %s1310_s30 }
 0x249   : > { %p945_p12 = pnand %p944_p11, %p1145_p10 }
 0x24a   : > { %p950_p0 = por %p949_p13, %p948_p6 }
 0x24b   : > { %p946_p3 = pneg %p945_p12 }
 0x24c   : > { %p952_p9 = por %p951_p5, %p950_p0 }
 0x24e   : > { %p953_p1 = pnand %p952_p9, %p946_p3 }
 0x250   : > { %956 = shalt.err (!%p953_p1)
}
 0x251   : > { %766 = dma.vmem_to_hbm [thread:$0]  (%p1145_p10), %s1305_s20, 128, %s1310_s30, %s452_s7  }
 0x252 PF: > { %s479_s5 = sand.u32 1, %s999_s12   ;;  %p1382_p2 = scmp.ne.s32.totalorder %s1368_s21, 0 }
 0x253   : > { %p1383_p7 = scmp.ge.s32.totalorder %s1019_s17, 2  ;;  %s480_s8 = scalar_lea.sflag [#allocation5], %s479_s5 }
 0x255   : > { %p780_p4 = pnand %p1383_p7, %p1382_p2 }
 0x257   : > { %994 = dma.done.wait (!%p780_p4), %s480_s8, 128  }
 0x258   : > { %996 = vsyncadd (!%p780_p4), %s480_s8, 4294967168  ;;  %s22_s17 = sadd.s32 1, %s1019_s17   ;;  %s1384_s12 = smov %s1003_s13 }
 0x259   : > { %p19_p8 = scmp.ge.s32.totalorder %s22_s17, 4   ;;  %s1385_s13 = smov %s1007_s14 }
 0x25a   : > { %s1386_s14 = smov %s1157_s29  ;;  %s1387_s15 = smov %s1015_s16 }
 0x25b   : > { %s1388_s16 = smov %s1390_s26  ;;  %21 = sbr.rel (!%p19_p8) target bundleno = 10 (0xa), region = 98 }
 0x262   :  { %485 = vsyncpa [#allocation4], 1 }
 0x263   :  { %487 = vsyncpa [#allocation4 + $0x1], 1 }
 0x264   :  { %488 = vsyncpa [#allocation7], 1 }
 0x265   :  { %490 = vsyncpa [#allocation7 + $0x1], 1 }
 0x266   :  { %491 = vsyncpa [#allocation5], 1 }
 0x267   :  { %493 = vsyncpa [#allocation5 + $0x1], 1 }

</bundles_post_ra>
